<compile_context>
chip_gen: v7x
topology: tpu7x:2x2x1
jax: 0.10.0
libtpu: 0.0.40
codegen_flags: <defaults>
</compile_context>

<pallas_src>
import functools

import jax
import jax.numpy as jnp
from jax.experimental import pallas as pl
from jax.experimental.pallas import tpu as pltpu

LN_EPS = 1e-5
LANE = 128


def _hash_kernel(x_ref, w_ref, g_ref, b_ref, o_ref, *, inv_n, n_bits):
    # x_ref: (tb, fc_dim) native dtype; w_ref: (fc_dim, n_pad) f32;
    # g_ref/b_ref: (1, n_pad) f32; o_ref: (tb, n_pad) x.dtype.
    x = x_ref[...].astype(jnp.float32)            # in-kernel cast, hidden under DMA
    h = jnp.dot(x, w_ref[...], preferred_element_type=jnp.float32)

    # LayerNorm over the real n_bits columns.  Padded weight columns are zero,
    # so h == 0 there and the mean sum over the padded width is exact.
    mean = jnp.sum(h, axis=-1, keepdims=True) * inv_n
    # Two-pass variance; mask padded lanes out of the (h - mean)^2 reduction.
    col = jax.lax.broadcasted_iota(jnp.int32, h.shape, 1)
    d = jnp.where(col < n_bits, h - mean, 0.0)
    var = jnp.sum(d * d, axis=-1, keepdims=True) * inv_n

    normed = (h - mean) * jax.lax.rsqrt(var + LN_EPS)
    # gamma/beta are 0 in padded lanes -> padded outputs are tanh(0) = 0.
    y = normed * g_ref[...] + b_ref[...]
    o_ref[...] = jnp.tanh(y).astype(o_ref.dtype)


def prepare_hash_params(w_t, gamma, beta):
    """One-time model setup: pad the N_bits axis to a 128-lane multiple.

    w_t: (fc_dim, N_bits) == PyTorch Linear weight transposed.
    gamma/beta: (N_bits,).  Returns (w_p, g2, b2, n_bits)."""
    fc_dim, n_bits = w_t.shape
    n_pad = max(LANE, pl.cdiv(n_bits, LANE) * LANE)
    pad = n_pad - n_bits
    w_p = jnp.pad(w_t.astype(jnp.float32), ((0, 0), (0, pad)))
    g2 = jnp.pad(gamma.astype(jnp.float32).reshape(1, -1), ((0, 0), (0, pad)))
    b2 = jnp.pad(beta.astype(jnp.float32).reshape(1, -1), ((0, 0), (0, pad)))
    return w_p, g2, b2, n_bits


def _pick_tb(batch, fc_dim, x_itemsize, n_pad, out_itemsize, sub,
             target_x_bytes=2 << 20, vmem_budget=10 << 20):
    """Byte-sized batch tile: ~2 MiB X DMAs, bounded by a VMEM budget,
    >= 2 grid steps when the batch allows it (v7x megacore, DMA overlap)."""
    weight_bytes = 2 * fc_dim * n_pad * 4 + 4 * n_pad * 4   # resident params
    per_row = 2 * fc_dim * x_itemsize + 2 * n_pad * out_itemsize  # dbl-buffered
    avail = max(vmem_budget - weight_bytes, per_row * sub)
    cap_vmem = max(sub, avail // per_row)
    cap_dma = max(sub, target_x_bytes // max(1, fc_dim * x_itemsize))
    tb = min(batch, cap_vmem, cap_dma)
    if batch >= 2 * sub:
        tb = min(tb, -(-batch // 2))          # keep >= 2 grid steps
    tb = max(sub, (tb // sub) * sub)
    return int(tb)


def hash_func_forward_prepared(x, w_p, g2, b2, n_bits, *, tb=None):
    """x: (B, fc_dim); prepared params from prepare_hash_params.
    Returns tanh(LayerNorm(x @ W^T)) of shape (B, n_bits), dtype x.dtype."""
    B, fc_dim = x.shape
    n_pad = w_p.shape[1]
    out_dtype = x.dtype
    out_itemsize = jnp.dtype(out_dtype).itemsize
    x_itemsize = jnp.dtype(x.dtype).itemsize
    sub = max(8, 32 // min(out_itemsize, x_itemsize))   # sublane multiple per dtype

    if tb is None:
        tb = _pick_tb(B, fc_dim, x_itemsize, n_pad, out_itemsize, sub)

    # Ragged batch: pad B up to a tile multiple (bounded tiles, then slice).
    b_pad = pl.cdiv(B, tb) * tb
    x_in = x if b_pad == B else jnp.pad(x, ((0, b_pad - B), (0, 0)))
    grid = (b_pad // tb,)

    bytes_accessed = (x_in.size * x_itemsize + w_p.size * 4 + g2.size * 4
                      + b2.size * 4 + b_pad * n_pad * out_itemsize)
    cost = pl.CostEstimate(flops=2 * b_pad * fc_dim * n_bits,
                           transcendentals=b_pad * n_bits,
                           bytes_accessed=bytes_accessed)

    # Only raise the scoped-VMEM limit when the estimate actually needs it.
    vmem_est = (2 * tb * fc_dim * x_itemsize + 2 * fc_dim * n_pad * 4
                + 4 * n_pad * 4 + 2 * tb * n_pad * out_itemsize)
    cp_kwargs = dict(dimension_semantics=("parallel",))
    if vmem_est > (12 << 20):
        cp_kwargs["vmem_limit_bytes"] = min(int(vmem_est * 3 // 2), 60 << 20)

    kernel = functools.partial(_hash_kernel, inv_n=1.0 / float(n_bits),
                               n_bits=n_bits)

    out_padded = pl.pallas_call(
        kernel,
        out_shape=jax.ShapeDtypeStruct((b_pad, n_pad), out_dtype),
        grid_spec=pltpu.PrefetchScalarGridSpec(
            num_scalar_prefetch=0,
            grid=grid,
            in_specs=[
                pl.BlockSpec((tb, fc_dim), lambda i: (i, 0)),     # X tile
                pl.BlockSpec((fc_dim, n_pad), lambda i: (0, 0)),  # weight (resident)
                pl.BlockSpec((1, n_pad), lambda i: (0, 0)),       # gamma
                pl.BlockSpec((1, n_pad), lambda i: (0, 0)),       # beta
            ],
            out_specs=pl.BlockSpec((tb, n_pad), lambda i: (i, 0)),
        ),
        compiler_params=pltpu.CompilerParams(**cp_kwargs),
        cost_estimate=cost,
    )(x_in, w_p, g2, b2)

    return out_padded[:B, :n_bits]


def hash_func_forward(x, w_t, gamma, beta, *, tb=None):
    """Convenience wrapper (pads params per call; prefer prepare_hash_params
    once + hash_func_forward_prepared in a real model loop)."""
    w_p, g2, b2, n_bits = prepare_hash_params(w_t, gamma, beta)
    return hash_func_forward_prepared(x, w_p, g2, b2, n_bits, tb=tb)


def reference_forward(x, w_t, gamma, beta):
    h = x @ w_t
    mean = jnp.mean(h, axis=-1, keepdims=True)
    var = jnp.mean((h - mean) ** 2, axis=-1, keepdims=True)
    normed = (h - mean) / jnp.sqrt(var + LN_EPS)
    return jnp.tanh(normed * gamma + beta)


if __name__ == "__main__":
    # Small shapes consistent with the module's forward: X is (batch, fc_dim).
    NB_CLS = 21
    batch, fc_dim, n_bits = 16, 32, 64

    key = jax.random.PRNGKey(0)
    kx, kw, kp = jax.random.split(key, 3)

    x = jax.random.normal(kx, (batch, fc_dim), dtype=jnp.float32)

    # Linear weight: PyTorch shape (N_bits, fc_dim); stored transposed here.
    bound = 1.0 / jnp.sqrt(fc_dim)
    w_t = jax.random.uniform(kw, (fc_dim, n_bits), minval=-bound, maxval=bound,
                             dtype=jnp.float32)

    # LayerNorm params (default init: gamma=1, beta=0)
    gamma = jnp.ones((n_bits,), dtype=jnp.float32)
    beta = jnp.zeros((n_bits,), dtype=jnp.float32)

    # self.P parameter: xavier_uniform with tanh gain.  Not used in forward.
    # TODO(synk): self.P never participates in forward(); kept only for parity.
    gain = 5.0 / 3.0
    p_bound = gain * jnp.sqrt(6.0 / (NB_CLS + n_bits))
    P = jax.random.uniform(kp, (NB_CLS, n_bits), minval=-p_bound,
                           maxval=p_bound, dtype=jnp.float32)

    ref = reference_forward(x, w_t, gamma, beta)

    # One-time param prep (as a real model would do), then the fast path.
    w_p, g2, b2, nb = prepare_hash_params(w_t, gamma, beta)
    out = jax.block_until_ready(hash_func_forward_prepared(x, w_p, g2, b2, nb))
    assert out.shape == (batch, n_bits)
    assert out.dtype == x.dtype
    assert jnp.allclose(out, ref, atol=1e-5, rtol=1e-5), "mismatch vs reference"

    # Ragged-batch path (B not a multiple of the tile): pads B and slices back.
    x_odd = x[:10]
    out_odd = jax.block_until_ready(hash_func_forward(x_odd, w_t, gamma, beta))
    assert out_odd.shape == (10, n_bits)
    assert jnp.allclose(out_odd, ref[:10], atol=1e-5, rtol=1e-5), "ragged mismatch"

    print("KERNEL_OK")
</pallas_src>

<mosaic_0001>
module attributes {stable_mosaic.version = 11 : i64} {
  func.func @_hash_kernel(%arg0: i32, %arg1: memref<8x32xf32, #tpu.memory_space<vmem>>, %arg2: memref<32x128xf32, #tpu.memory_space<vmem>>, %arg3: memref<1x128xf32, #tpu.memory_space<vmem>>, %arg4: memref<1x128xf32, #tpu.memory_space<vmem>>, %arg5: memref<8x128xf32, #tpu.memory_space<vmem>>) attributes {dimension_semantics = [#tpu.dimension_semantics<parallel>], iteration_bounds = array<i64: 2>, scalar_prefetch = 0 : i64, scratch_operands = 0 : i64, tpu.core_type = #tpu.core_type<tc>, window_params = [{transform_indices = @transform_0, window_bounds = array<i64: 8, 32>}, {pipeline_mode = #tpu.pipeline_mode<synchronous>, transform_indices = @transform_1, window_bounds = array<i64: 32, 128>}, {pipeline_mode = #tpu.pipeline_mode<synchronous>, transform_indices = @transform_2, window_bounds = array<i64: 1, 128>}, {pipeline_mode = #tpu.pipeline_mode<synchronous>, transform_indices = @transform_3, window_bounds = array<i64: 1, 128>}, {transform_indices = @transform_4, window_bounds = array<i64: 8, 128>}]} {
    %c0 = arith.constant 0 : index
    %c0_0 = arith.constant 0 : index
    %0 = vector.load %arg1[%c0, %c0_0] : memref<8x32xf32, #tpu.memory_space<vmem>>, vector<8x32xf32>
    %c0_1 = arith.constant 0 : index
    %c0_2 = arith.constant 0 : index
    %1 = vector.load %arg2[%c0_1, %c0_2] : memref<32x128xf32, #tpu.memory_space<vmem>>, vector<32x128xf32>
    %cst = arith.constant dense<0.000000e+00> : vector<8x128xf32>
    %2 = tpu.matmul %0, %1, %cst {dimension_numbers = #tpu.dot_dimension_numbers<[1], [0], [0], [1], [0, 0, 1, 1], [], []>} : vector<8x32xf32>, vector<32x128xf32>, vector<8x128xf32> -> vector<8x128xf32>
    %cst_3 = arith.constant dense<0.000000e+00> : vector<8xf32>
    %3 = vector.multi_reduction <add>, %2, %cst_3 [1] : vector<8x128xf32> to vector<8xf32>
    %4 = vector.shape_cast %3 : vector<8xf32> to vector<8x1xf32>
    %cst_4 = arith.constant 1.562500e-02 : f32
    %5 = vector.broadcast %cst_4 : f32 to vector<8x1xf32>
    %6 = arith.mulf %4, %5 : vector<8x1xf32>
    %7 = tpu.iota {dimensions = array<i32: 1>} : vector<8x128xi32>
    %c64_i32 = arith.constant 64 : i32
    %8 = vector.broadcast %c64_i32 : i32 to vector<8x128xi32>
    %9 = arith.cmpi slt, %7, %8 : vector<8x128xi32>
    %10 = vector.broadcast %6 : vector<8x1xf32> to vector<8x128xf32>
    %11 = arith.subf %2, %10 : vector<8x128xf32>
    %cst_5 = arith.constant 0.000000e+00 : f32
    %12 = vector.broadcast %cst_5 : f32 to vector<8x128xf32>
    %13 = arith.select %9, %11, %12 : vector<8x128xi1>, vector<8x128xf32>
    %14 = arith.mulf %13, %13 : vector<8x128xf32>
    %cst_6 = arith.constant dense<0.000000e+00> : vector<8xf32>
    %15 = vector.multi_reduction <add>, %14, %cst_6 [1] : vector<8x128xf32> to vector<8xf32>
    %16 = vector.shape_cast %15 : vector<8xf32> to vector<8x1xf32>
    %cst_7 = arith.constant 1.562500e-02 : f32
    %17 = vector.broadcast %cst_7 : f32 to vector<8x1xf32>
    %18 = arith.mulf %16, %17 : vector<8x1xf32>
    %19 = vector.broadcast %6 : vector<8x1xf32> to vector<8x128xf32>
    %20 = arith.subf %2, %19 : vector<8x128xf32>
    %cst_8 = arith.constant 9.99999974E-6 : f32
    %21 = vector.broadcast %cst_8 : f32 to vector<8x1xf32>
    %22 = arith.addf %18, %21 : vector<8x1xf32>
    %23 = math.rsqrt %22 : vector<8x1xf32>
    %24 = vector.broadcast %23 : vector<8x1xf32> to vector<8x128xf32>
    %25 = arith.mulf %20, %24 : vector<8x128xf32>
    %c0_9 = arith.constant 0 : index
    %c0_10 = arith.constant 0 : index
    %26 = vector.load %arg3[%c0_9, %c0_10] : memref<1x128xf32, #tpu.memory_space<vmem>>, vector<1x128xf32>
    %27 = vector.broadcast %26 : vector<1x128xf32> to vector<8x128xf32>
    %28 = arith.mulf %25, %27 : vector<8x128xf32>
    %c0_11 = arith.constant 0 : index
    %c0_12 = arith.constant 0 : index
    %29 = vector.load %arg4[%c0_11, %c0_12] : memref<1x128xf32, #tpu.memory_space<vmem>>, vector<1x128xf32>
    %30 = vector.broadcast %29 : vector<1x128xf32> to vector<8x128xf32>
    %31 = arith.addf %28, %30 : vector<8x128xf32>
    %32 = math.tanh %31 : vector<8x128xf32>
    %c0_13 = arith.constant 0 : index
    %c0_14 = arith.constant 0 : index
    %33 = vector.load %arg5[%c0_13, %c0_14] : memref<8x128xf32, #tpu.memory_space<vmem>>, vector<8x128xf32>
    tpu.vector_store %arg5[%c0_13, %c0_14], %32 {strides = array<i32>} : memref<8x128xf32, #tpu.memory_space<vmem>>, vector<8x128xf32>,
    return
  }
  func.func @transform_0(%arg0: i32) -> (i32, i32) {
    %c0_i32 = arith.constant 0 : i32
    %c0_i32_0 = arith.constant 0 : i32
    return %arg0, %c0_i32 : i32, i32
  }
  func.func @transform_1(%arg0: i32) -> (i32, i32) {
    %c0_i32 = arith.constant 0 : i32
    %c0_i32_0 = arith.constant 0 : i32
    %c0_i32_1 = arith.constant 0 : i32
    return %c0_i32, %c0_i32_0 : i32, i32
  }
  func.func @transform_2(%arg0: i32) -> (i32, i32) {
    %c0_i32 = arith.constant 0 : i32
    %c0_i32_0 = arith.constant 0 : i32
    %c0_i32_1 = arith.constant 0 : i32
    return %c0_i32, %c0_i32_0 : i32, i32
  }
  func.func @transform_3(%arg0: i32) -> (i32, i32) {
    %c0_i32 = arith.constant 0 : i32
    %c0_i32_0 = arith.constant 0 : i32
    %c0_i32_1 = arith.constant 0 : i32
    return %c0_i32, %c0_i32_0 : i32, i32
  }
  func.func @transform_4(%arg0: i32) -> (i32, i32) {
    %c0_i32 = arith.constant 0 : i32
    %c0_i32_0 = arith.constant 0 : i32
    return %arg0, %c0_i32 : i32, i32
  }
}

</mosaic_0001>

<bundles_post_ra>
// kernel: tpu_custom_call.1
= control target key start
LH: loop header
LB: loop body
LE: loop exit
PB: predicated region body
PF: predicated region fallthrough
CT: control target
= control target key end

     0   :  { %9 = vsyncpa [#allocation3], 0  ;;  %s908_s0 = inlined_call_operand.hbm [shape: f32[16,32], index: 0, kind: input, shape index: {}]   ;;  %s909_s1 = inlined_call_operand.hbm [shape: f32[32,128], index: 1, kind: input, shape index: {}]   ;;  %s910_s2 = inlined_call_operand.vmem [shape: f32[1,128], index: 2, kind: input, shape index: {}]   ;;  %s911_s3 = inlined_call_operand.vmem [shape: f32[1,128], index: 3, kind: input, shape index: {}]   ;;  %s912_s4 = inlined_call_operand.hbm [shape: f32[16,128], index: 4, kind: output, shape index: {}]  }
   0x1   :  { %11 = vsyncpa [#allocation3 + $0x1], 0 }
   0x2   :  { %12 = vsyncpa [#allocation6], 0 }
   0x3   :  { %13 = vsyncpa [#allocation4], 0 }
   0x4   :  { %15 = vsyncpa [#allocation4 + $0x1], 0  ;;  %s702_s15 = smov 0   ;;  %s704_s16 = smov 0  }
   0x5   :  { %s706_s17 = smov 0   ;;  %s708_s18 = smov 0  }
   0x6 LB: > { %s723_s19 = sadd.s32 4294967295, %s667_s18   ;;  %s434_s20 = sadd.s32 4294967294, %s667_s18   ;;  %s667_s18 = sphi %s708_s18, %s932_s18   ;;  %s663_s17 = sphi %s706_s17, %s931_s17   ;;  %s659_s16 = sphi %s704_s16, %s930_s16   ;;  %s655_s15 = sphi %s702_s15, %s929_s15  }
   0x7   : > { %p41_p0 = scmp.ne.s32.totalorder %s659_s16, %s655_s15  ;;  %p913_p1 = scmp.eq.s32.totalorder %s723_s19, 0 }
   0x8   : > { %p134_p3 = scmp.eq.s32.totalorder %s434_s20, 1  ;;  %p435_p5 = scmp.ge.s32.totalorder %s667_s18, 1 }
   0x9   : > { %p732_p4 = por %p913_p1, %p41_p0  ;;  %p141_p7 = scmp.lt.s32.totalorder %s667_s18, 3 }
   0xa   : > { %p737_p6 = por %p134_p3, %p41_p0  ;;  %s669_s24 = smov [#allocation5]  }
   0xb   : > { %s916_s21 = scalar_select %p732_p4, 1, 0 }
   0xc   : > { %s917_s22 = scalar_select %p737_p6, 1, 0 }
   0xd   : > { %p742_p8 = pnand %p435_p5, %p141_p7  ;;  %s153_s25 = sshll.u32 %s669_s24, 4  ;;  %s746_s25 = int_to_ptr.vmem [resolvable:$true] %s153_s25 }
   0xe   : > { %s758_s27 = sadd.s32 1, %s667_s18   ;;  %s28_s28 = sadd.s32 1, %s663_s17 }
   0xf   : > { %s918_s23 = scalar_select %p742_p8, 1, 0 }
  0x10   : > { %p481_p9 = pneg %p742_p8  ;;  %s25_s29 = ssub.s32 %s667_s18, %s758_s27 }
  0x11   : > { %s539_s6 = scalar_lea.hbm %s909_s1, 512 }
  0x12   : > { %p753_p11 = pnand %p481_p9, %p913_p1  ;;  %p540_p12 = scmp.ne.s32.totalorder %s909_s1, %s539_s6 }
  0x13   : > { %p546_p5 = scmp.lt.u32.totalorder %s539_s6, %s909_s1 }
  0x14   : > { %p541_p13 = pneg %p753_p11 }
  0x16   : > { %p542_p0 = pnand %p541_p13, %p540_p12 }
  0x18   : > { %p543_p3 = pneg %p542_p0 }
  0x1a   : > { %p548_p7 = pnand %p546_p5, %p543_p3 }
  0x1c   : > { %551 = shalt.err (!%p548_p7)
}
  0x1d   : > { %s552_s11 = scalar_lea.vmem %s746_s25, 512  ;;  %p560_p2 = scmp.lt.s32.totalorder %s746_s25, %s746_s25 }
  0x1e   : > { %p553_p9 = scmp.ne.s32.totalorder %s746_s25, %s552_s11  ;;  %p561_p6 = scmp.lt.s32.totalorder %s552_s11, %s552_s11 }
  0x20   : > { %p555_p10 = pnand %p553_p9, %p541_p13  ;;  %p562_p4 = por %p561_p6, %p560_p2 }
  0x22   : > { %p556_p1 = pneg %p555_p10 }
  0x24   : > { %p563_p8 = pnand %p562_p4, %p556_p1 }
  0x26   : > { %566 = shalt.err (!%p563_p8)
}
  0x27   : > { %s670_s12 = smov 128   ;;  %s671_s13 = smov 8  }
  0x28   : > { %484 = dma.hbm_to_vmem [thread:$0]  (!%p753_p11), %s909_s1, 512, %s746_s25, [#allocation6], %s670_s12, %s670_s12, %s671_s13  }
  0x29   : > { %p26_p2 = scmp.eq.s32.totalorder %s25_s29, 0  ;;  %p35_p1 = scmp.ne.s32.totalorder %s663_s17, %s659_s16 }
  0x2a   : > { %p36_p4 = scmp.eq.s32.totalorder %s667_s18, 0  ;;  %p494_p6 = scmp.lt.s32.totalorder %s667_s18, 2 }
  0x2b   : > { %s789_s24 = scalar_select %p26_p2, %s663_s17, %s28_s28  }
  0x2c   : > { %p37_p8 = por %p36_p4, %p35_p1  ;;  %p920_p10 = scmp.eq.s32.totalorder %s723_s19, 1 }
  0x2d   : > { %s173_s5 = sand.u32 1, %s663_s17   ;;  %s439_s6 = sshll.u32 %s667_s18, 7 }
  0x2e   : > { %p793_p12 = por %p920_p10, %p35_p1  ;;  %s438_s7 = sshll.u32 %s173_s5, 3 }
  0x2f   : > { %s802_s9 = scalar_lea.hbm %s908_s0, %s439_s6  ;;  %s177_s25 = scalar_lea.vmem [#allocation2], %s438_s7 }
  0x30   : > { %s184_s28 = sshll.u32 %s177_s25, 4  ;;  %p804_p11 = pnand %p494_p6, %p37_p8  ;;  %s808_s28 = int_to_ptr.vmem [resolvable:$true] %s184_s28 }
  0x31   : > { %s174_s10 = scalar_lea.sflag [#allocation3], %s173_s5  ;;  %s567_s11 = scalar_lea.hbm %s802_s9, 128 }
  0x32   : > { %p568_p13 = scmp.ne.s32.totalorder %s802_s9, %s567_s11  ;;  %p569_p0 = pneg %p804_p11 }
  0x33   : > { %s572_s14 = scalar_lea.hbm %s908_s0, 256  ;;  %p573_p7 = scmp.lt.u32.totalorder %s802_s9, %s908_s0 }
  0x34   : > { %p570_p3 = pnand %p569_p0, %p568_p13  ;;  %p574_p9 = scmp.lt.u32.totalorder %s572_s14, %s567_s11 }
  0x35   : > { %p576_p1 = scmp.lt.u32.totalorder %s567_s11, %s802_s9 }
  0x36   : > { %p571_p5 = pneg %p570_p3  ;;  %p575_p2 = por %p574_p9, %p573_p7 }
  0x38   : > { %p577_p4 = por %p576_p1, %p575_p2 }
  0x3a   : > { %p578_p6 = pnand %p577_p4, %p571_p5 }
  0x3c   : > { %581 = shalt.err (!%p578_p6)
}
  0x3d   : > { %s582_s5 = scalar_lea.vmem %s808_s28, 128  ;;  %s672_s7 = smov [#allocation2]  }
  0x3e   : > { %p583_p8 = scmp.ne.s32.totalorder %s808_s28, %s582_s5  ;;  %s587_s26 = sshll.u32 %s672_s7, 4  ;;  %s588_s26 = int_to_ptr.vmem [resolvable:$false] %s587_s26 }
  0x3f   : > { %s589_s8 = scalar_lea.vmem %s588_s26, 256  ;;  %p590_p3 = scmp.lt.s32.totalorder %s808_s28, %s588_s26 }
  0x40   : > { %p585_p10 = pnand %p583_p8, %p569_p0  ;;  %p591_p7 = scmp.lt.s32.totalorder %s589_s8, %s582_s5 }
  0x42   : > { %p586_p13 = pneg %p585_p10  ;;  %p592_p9 = por %p591_p7, %p590_p3 }
  0x44   : > { %p593_p2 = pnand %p592_p9, %p586_p13 }
  0x46   : > { %596 = shalt.err (!%p593_p2)
}
  0x47   : > { %488 = dma.hbm_to_vmem [thread:$0]  (!%p804_p11), %s802_s9, 128, %s808_s28, %s174_s10  }
  0x48   : > { %p923_p5 = scmp.ne.s32.totalorder %s918_s23, 0 }
  0x49   : > { %s838_s25 = sand.u32 (!%p923_p5), 1, %s659_s16   ;;  %p924_p0 = scmp.ne.s32.totalorder (!%p923_p5), %s916_s21, 0 }
  0x4a   : > { %193 = sbr.rel (%p923_p5) target bundleno = 644 (0x284), region = 36  ;;  %s441_s11 = sshll.u32 (!%p923_p5), %s838_s25, 3 }
  0x4b   : > { %s196_s12 = scalar_lea.sflag (!%p923_p5), [#allocation3], %s838_s25  ;;  %s199_s13 = scalar_lea.vmem (!%p923_p5), [#allocation2], %s441_s11 }
  0x51   : > { %642 = dma.done.wait (%p924_p0), %s196_s12, 128  }
  0x52   : > { %644 = vsyncadd (%p924_p0), %s196_s12, 4294967168  ;;  %p925_p11 = scmp.eq.s32.totalorder %s723_s19, 0 }
  0x54   : > { %646 = dma.done.wait (%p925_p11), [#allocation6], 512   ;;  %p926_p1 = pmov %p925_p11 }
  0x55   : > { %v673_v0 = vmov 0.0|0.0   ;;  %vm674_vm0 = vmmov 0   ;;  %v675_v1 = vmov 0.0   ;;  %v229_v2 = vld [vmem:[#allocation5] sm:$0xff]  ;;  %v230_v3 = vld [vmem:[#allocation5 + $0x8] sm:$0xff]  ;;  %v231_v4 = vld [vmem:[#allocation5 + $0x10] sm:$0xff]  ;;  %v310_v11 = vlaneseq }
  0x56   : > { %648 = vsyncadd (%p926_p1), [#allocation6], 4294966784  ;;  %467 = vmatprep.subr.bf16.mxu0 %v673_v0  ;;  %464 = vmatprep.mubr.msk.f32.mxu0 %vm674_vm0, %v675_v1  ;;  %v468_v5 = vpack.c.bf16 %v230_v3, %v229_v2  ;;  %v232_v6 = vld [vmem:[#allocation5 + $0x18] sm:$0xff]  ;;  %vm233_vm1 = vcmask 261120   ;;  %v445_v22 = vld [vmem:[%s910_s2] ss:$0 sm:$0xff] }
  0x57   : > { %v471_v7 = vpack.c.bf16 %v232_v6, %v231_v4  ;;  %v228_v8 = vld [vmem:[%s199_s13] sm:$0xff]  ;;  %v311_v12 = vand.u32 127, %v310_v11  ;;  %s448_s29 = sshll.u32 %s723_s19, 7  ;;  %s227_s10 = scalar_lea.vmem [#allocation7], %s441_s11 }
  0x58   : > { %469 = vmatpush3.bf16.msra.mxu0 %v468_v5  ;;  %v446_v24 = vld [vmem:[%s911_s3] ss:$0 sm:$0xff]  ;;  %s354_s14 = sshll.u32 %s227_s10, 4  ;;  %s864_s5 = scalar_lea.hbm %s912_s4, %s448_s29  ;;  %s866_s14 = int_to_ptr.vmem [resolvable:$true] %s354_s14 }
  0x59   : > { %470 = vmatprep.subr.bf16.mxu0 %v673_v0  ;;  %vm312_vm2 = vcmp.lt.s32.totalorder %v311_v12, 64  ;;  %s341_s7 = scalar_lea.sflag [#allocation4], %s838_s25  ;;  %s597_s26 = scalar_lea.vmem %s866_s14, 128 }
  0x5a   : > { %p598_p4 = scmp.ne.s32.totalorder %s866_s14, %s597_s26  ;;  %s676_s19 = smov [#allocation7]  }
  0x5b   : > { %s601_s8 = sshll.u32 %s676_s19, 4  ;;  %s602_s8 = int_to_ptr.vmem [resolvable:$false] %s601_s8 }
  0x5c   : > { %472 = vmatpush3.bf16.msra.mxu0 %v471_v7  ;;  %p599_p6 = pnand %p598_p4, %p793_p12  ;;  %s603_s11 = scalar_lea.vmem %s602_s8, 256 }
  0x5d   : > { %p604_p10 = scmp.lt.s32.totalorder %s866_s14, %s602_s8  ;;  %p605_p13 = scmp.lt.s32.totalorder %s603_s11, %s597_s26 }
  0x5e   : > { %p600_p8 = pneg %p599_p6 }
  0x5f   : > { %465 = vmatmul.mubr.msk.f32.vlgmr.msra.gmra.mrb[0].mxu0 %vm233_vm1, %v228_v8  ;;  %p606_p3 = por %p605_p13, %p604_p10 }
  0x61   : > { %p607_p7 = pnand %p606_p3, %p600_p8 }
 0x132   : > { %v303_v9 = vpop.f32.mrb[0].mxu0 }
 0x133   : > { %307 = vadd.xlane.f32.xlu0 %v303_v9  ;;  %v466_v10 = vpop.f32.mrb[1].mxu0 }
 0x1c0   : > { %v308_v13 = vpop.xlane.xlu0 %307 }
 0x1c1   : > { %v309_v14 = vmul.f32 0.015625, %v308_v13 }
 0x1c3   : > { %v313_v15 = vsub.f32 %v303_v9, %v309_v14 }
 0x1c5   : > { %v314_v16 = vsel %vm312_vm2, %v313_v15, 0.0 }
 0x1c6   : > { %v315_v17 = vmul.f32 %v314_v16, %v314_v16 }
 0x1c8   : > { %316 = vadd.xlane.f32.xlu0 %v315_v17 }
 0x255   : > { %v317_v18 = vpop.xlane.xlu0 %316 }
 0x256   : > { %v318_v19 = vmul.f32 0.015625, %v317_v18 }
 0x258   : > { %v319_v20 = vadd.f32 1e-05, %v318_v19 }
 0x25a   : > { %535 = vrsqrt.f32 %v319_v20 }
 0x264   : > { %v536_v21 = vpop.eup %535 }
 0x265   : > { %v321_v23 = vmul.f32 %v536_v21, %v313_v15 }
 0x267   : > { %v329_v25 = vmul.f32 %v445_v22, %v321_v23 }
 0x269   : > { %v337_v26 = vadd.f32 %v446_v24, %v329_v25 }
 0x26b   : > { %537 = vtanh.f32 %v337_v26 }
 0x275   : > { %v538_v27 = vpop.eup %537 }
 0x276   : > { %339 = vst [vmem:[%s227_s10] sm:$0xff] %v538_v27 }
 0x277   : > { %610 = shalt.err (!%p607_p7)
}
 0x278   : > { %s611_s25 = scalar_lea.hbm %s864_s5, 128  ;;  %s615_s21 = scalar_lea.hbm %s912_s4, 256 }
 0x279   : > { %p612_p9 = scmp.ne.s32.totalorder %s864_s5, %s611_s25  ;;  %p616_p0 = scmp.lt.u32.totalorder %s864_s5, %s912_s4 }
 0x27a   : > { %p617_p11 = scmp.lt.u32.totalorder %s615_s21, %s611_s25  ;;  %p619_p4 = scmp.lt.u32.totalorder %s611_s25, %s864_s5 }
 0x27b   : > { %p613_p2 = pnand %p612_p9, %p793_p12 }
 0x27c   : > { %p618_p1 = por %p617_p11, %p616_p0 }
 0x27d   : > { %p614_p5 = pneg %p613_p2 }
 0x27e   : > { %p620_p6 = por %p619_p4, %p618_p1 }
 0x280   : > { %p621_p8 = pnand %p620_p6, %p614_p5 }
 0x282   : > { %624 = shalt.err (!%p621_p8)
}
 0x283   : > { %479 = dma.vmem_to_hbm [thread:$0]  (%p793_p12), %s866_s14, 128, %s864_s5, %s341_s7  }
 0x284 PF: > { %s366_s28 = sand.u32 1, %s655_s15   ;;  %p927_p10 = scmp.ne.s32.totalorder %s917_s22, 0 }
 0x285   : > { %p928_p13 = scmp.ge.s32.totalorder %s667_s18, 2  ;;  %s367_s29 = scalar_lea.sflag [#allocation4], %s366_s28 }
 0x287   : > { %p490_p3 = pnand %p928_p13, %p927_p10 }
 0x289   : > { %650 = dma.done.wait (!%p490_p3), %s367_s29, 128  }
 0x28a   : > { %652 = vsyncadd (!%p490_p3), %s367_s29, 4294967168  ;;  %p18_p7 = scmp.ge.s32.totalorder %s758_s27, 4   ;;  %s929_s15 = smov %s659_s16 }
 0x28b   : > { %s930_s16 = smov %s663_s17  ;;  %s931_s17 = smov %s789_s24 }
 0x28c   : > { %s932_s18 = smov %s758_s27  ;;  %20 = sbr.rel (!%p18_p7) target bundleno = 6 (0x6), region = 85 }
 0x293   :  { %372 = vsyncpa [#allocation3], 1 }
 0x294   :  { %374 = vsyncpa [#allocation3 + $0x1], 1 }
 0x295   :  { %375 = vsyncpa [#allocation6], 1 }
 0x296   :  { %376 = vsyncpa [#allocation4], 1 }
 0x297   :  { %378 = vsyncpa [#allocation4 + $0x1], 1 }

</bundles_post_ra>
